<compile_context>
chip_gen: v5e
topology: v5e:2x2
jax: 0.10.0
libtpu: 0.0.40
codegen_flags: <defaults>
</compile_context>

<pallas_src>
import math
from functools import partial

import jax
import jax.numpy as jnp
from jax.experimental import pallas as pl
from jax.experimental.pallas import tpu as pltpu


def _cdiv(a, b):
    return -(-a // b)


def _round_up(x, m):
    return _cdiv(x, m) * m


# ----------------------------------------------------------------------------- kernel body
def _mlp_kernel(x_ref,
                w1_ref, b1_ref,
                w2_ref, b2_ref,
                w3_ref, b3_ref,
                w4_ref, b4_ref,
                o_ref):
    """Fused 4-layer MLP (3x Linear+ReLU, 1x Linear) on one (packed) row-tile."""
    x = x_ref[...]  # already the compute dtype; no redundant cast

    h = jnp.dot(x, w1_ref[...], preferred_element_type=jnp.float32) + b1_ref[...]
    h = jnp.maximum(h, 0.0)

    h = jnp.dot(h, w2_ref[...], preferred_element_type=jnp.float32) + b2_ref[...]
    h = jnp.maximum(h, 0.0)

    h = jnp.dot(h, w3_ref[...], preferred_element_type=jnp.float32) + b3_ref[...]
    h = jnp.maximum(h, 0.0)

    out = jnp.dot(h, w4_ref[...], preferred_element_type=jnp.float32) + b4_ref[...]
    o_ref[...] = out.astype(o_ref.dtype)


# ----------------------------------------------------------------------------- parameters
def init_params(key, hidden1, hidden2, hidden3, in_channels, out_channels,
                dtype=jnp.float32):
    """Deterministic parameter init (uniform, like torch Linear defaults)."""
    dims = [(in_channels, hidden1),
            (hidden1, hidden2),
            (hidden2, hidden3),
            (hidden3, in_channels * out_channels)]
    params = {}
    for li, (fan_in, fan_out) in enumerate(dims, start=1):
        key, kw, kb = jax.random.split(key, 3)
        bound = 1.0 / math.sqrt(fan_in)
        # stored as (in, out) so the kernel computes x @ W + b (same math as torch x @ W.T + b)
        params[f"w{li}"] = jax.random.uniform(kw, (fan_in, fan_out), dtype,
                                              minval=-bound, maxval=bound)
        params[f"b{li}"] = jax.random.uniform(kb, (1, fan_out), dtype,
                                              minval=-bound, maxval=bound)
    return params


# ----------------------------------------------------------------------------- tiling helpers
def _packing_factor(layer_dims, out_dim, max_packed_weight_bytes=8 << 20):
    """Rows packed per kernel row so the output (and intermediates) are 128-lane dense."""
    p = 128 // math.gcd(out_dim, 128)
    biggest_w = max(a * b for a, b in zip(layer_dims[:-1], layer_dims[1:]))
    if p > 32 or p * p * biggest_w * 4 > max_packed_weight_bytes:
        return 1  # packing would blow up the (resident) block-diagonal weights
    return p


def _choose_tile_p(np_rows, packed_out_dim, *, target_out_block_bytes=1 << 20,
                   max_tile=4096):
    """Tile size in *packed* rows (each packed row carries packed_out_dim f32 outputs)."""
    # Big tiles amortize the ~0.35us/step pipeline overhead; cap the output block at ~1 MiB
    # (double-buffered blocks stay far below VMEM limits on v5e/v6e/v7x) and keep >= ~8
    # grid steps so the 'parallel' grid axis can shard across both v7x TensorCores.
    by_bytes = max(8, (target_out_block_bytes // (packed_out_dim * 4)) // 8 * 8)
    by_steps = _round_up(_cdiv(np_rows, 8), 8)
    tile = min(by_bytes, by_steps, max_tile)
    if tile >= 256:                      # MXU-friendly alignment for large tiles
        tile = _round_up(tile, 256)
    return max(8, min(tile, np_rows))    # np_rows is a multiple of 8


# ----------------------------------------------------------------------------- forward pass
@partial(jax.jit,
         static_argnames=("in_channels", "out_channels", "tile_rows", "out_dtype"))
def kernel_forward(x, params, *, in_channels, out_channels,
                   tile_rows=None, out_dtype=None):
    """Pallas forward pass. x: (*, in_channels) -> (*, in_channels, out_channels)."""
    out_dim = in_channels * out_channels
    lead_shape = x.shape[:-1]
    n_rows = int(math.prod(lead_shape)) if lead_shape else 1
    out_dtype = x.dtype if out_dtype is None else out_dtype

    hidden_dims = [params["w1"].shape[1], params["w2"].shape[1], params["w3"].shape[1]]
    layer_dims = [in_channels] + hidden_dims + [out_dim]
    P = _packing_factor(layer_dims, out_dim)

    # Block-diagonalize the weights so P logical rows are processed per kernel row.
    # Under jit this is a tiny fused op (weights are ~KiB); in a real model it would be
    # precomputed once at load time.
    ws, bs = [], []
    for li in range(1, 5):
        w, b = params[f"w{li}"], params[f"b{li}"]
        if P > 1:
            w = jnp.kron(jnp.eye(P, dtype=w.dtype), w)   # (P*fan_in, P*fan_out)
            b = jnp.tile(b, (1, P))                      # (1, P*fan_out)
        ws.append(w)
        bs.append(b)

    # Flatten leading dims; pad only up to a multiple of 8*P rows (< 8*P extra rows,
    # usually zero) -- NOT up to the tile size.
    x2 = x.reshape(n_rows, in_channels)
    align_rows = 8 * P
    pad = (-n_rows) % align_rows
    if pad:
        x2 = jnp.pad(x2, ((0, pad), (0, 0)))
    np_rows = x2.shape[0] // P
    x2 = x2.reshape(np_rows, P * in_channels)            # byte-identical row-major view

    packed_out = P * out_dim                             # multiple of 128 when P > 1
    if tile_rows is None:
        tile_p = _choose_tile_p(np_rows, packed_out)
    else:
        tile_p = max(8, min(_round_up(_cdiv(tile_rows, P), 8), np_rows))
    num_blocks = _cdiv(np_rows, tile_p)                  # cdiv grid; partial tail block OK

    def full_spec(arr):
        # whole-array, grid-invariant block (resident across the grid, not re-DMA'd)
        return pl.BlockSpec(arr.shape, lambda i: (0, 0))

    param_specs = []
    for w, b in zip(ws, bs):
        param_specs.append(full_spec(w))
        param_specs.append(full_spec(b))

    out_packed = pl.pallas_call(
        _mlp_kernel,
        out_shape=jax.ShapeDtypeStruct((num_blocks * tile_p, packed_out), out_dtype),
        grid_spec=pltpu.PrefetchScalarGridSpec(
            num_scalar_prefetch=0,
            grid=(num_blocks,),
            in_specs=[pl.BlockSpec((tile_p, P * in_channels), lambda i: (i, 0))]
                     + param_specs,
            out_specs=pl.BlockSpec((tile_p, packed_out), lambda i: (i, 0)),
        ),
        compiler_params=pltpu.CompilerParams(
            dimension_semantics=("parallel",)),
    )(x2, ws[0], bs[0], ws[1], bs[1], ws[2], bs[2], ws[3], bs[3])

    # Byte-identical un-packing; slice only when padding / tail over-allocation happened.
    flat = out_packed.reshape(-1)
    needed = n_rows * out_dim
    if flat.shape[0] != needed:
        flat = flat[:needed]
    return flat.reshape(*lead_shape, in_channels, out_channels)


# ----------------------------------------------------------------------------- reference
def reference_forward(x, params, in_channels, out_channels):
    """Plain-JAX reference matching the PyTorch module semantics."""
    lead_shape = x.shape[:-1]
    h = jnp.maximum(x @ params["w1"] + params["b1"][0], 0.0)
    h = jnp.maximum(h @ params["w2"] + params["b2"][0], 0.0)
    h = jnp.maximum(h @ params["w3"] + params["b3"][0], 0.0)
    h = h @ params["w4"] + params["b4"][0]
    return h.reshape(*lead_shape, in_channels, out_channels)


if __name__ == "__main__":
    hidden1, hidden2, hidden3 = 32, 32, 32
    in_channels, out_channels = 4, 8
    batch, seq = 2, 8  # leading "*" dims

    key = jax.random.PRNGKey(0)
    k_params, k_x1, k_x2 = jax.random.split(key, 3)

    params = init_params(k_params, hidden1, hidden2, hidden3,
                         in_channels, out_channels)

    # Test 1: small, "nice" shape (single block).
    x = jax.random.normal(k_x1, (batch, seq, in_channels), dtype=jnp.float32)
    out = jax.block_until_ready(
        kernel_forward(x, params, in_channels=in_channels, out_channels=out_channels))
    ref = reference_forward(x, params, in_channels, out_channels)
    assert out.shape == (batch, seq, in_channels, out_channels), out.shape
    assert jnp.allclose(out, ref, atol=1e-5, rtol=1e-5), "mismatch vs reference (test 1)"

    # Test 2: multi-block grid with a partial tail input block.
    x_b = jax.random.normal(k_x2, (6, 48, in_channels), dtype=jnp.float32)
    out_b = jax.block_until_ready(
        kernel_forward(x_b, params, in_channels=in_channels, out_channels=out_channels))
    ref_b = reference_forward(x_b, params, in_channels, out_channels)
    assert out_b.shape == (6, 48, in_channels, out_channels), out_b.shape
    assert jnp.allclose(out_b, ref_b, atol=1e-5, rtol=1e-5), "mismatch vs reference (test 2)"

    print("KERNEL_OK")
</pallas_src>

<mosaic_0001>
module attributes {stable_mosaic.version = 11 : i64} {
  func.func @_mlp_kernel(%arg0: i32, %arg1: memref<8x16xf32, #tpu.memory_space<vmem>>, %arg2: memref<16x128xf32, #tpu.memory_space<vmem>>, %arg3: memref<1x128xf32, #tpu.memory_space<vmem>>, %arg4: memref<128x128xf32, #tpu.memory_space<vmem>>, %arg5: memref<1x128xf32, #tpu.memory_space<vmem>>, %arg6: memref<128x128xf32, #tpu.memory_space<vmem>>, %arg7: memref<1x128xf32, #tpu.memory_space<vmem>>, %arg8: memref<128x128xf32, #tpu.memory_space<vmem>>, %arg9: memref<1x128xf32, #tpu.memory_space<vmem>>, %arg10: memref<8x128xf32, #tpu.memory_space<vmem>>) attributes {dimension_semantics = [#tpu.dimension_semantics<parallel>], iteration_bounds = array<i64: 1>, scalar_prefetch = 0 : i64, scratch_operands = 0 : i64, tpu.core_type = #tpu.core_type<tc>, window_params = [{transform_indices = @transform_0, window_bounds = array<i64: 8, 16>}, {pipeline_mode = #tpu.pipeline_mode<synchronous>, transform_indices = @transform_1, window_bounds = array<i64: 16, 128>}, {pipeline_mode = #tpu.pipeline_mode<synchronous>, transform_indices = @transform_2, window_bounds = array<i64: 1, 128>}, {pipeline_mode = #tpu.pipeline_mode<synchronous>, transform_indices = @transform_3, window_bounds = array<i64: 128, 128>}, {pipeline_mode = #tpu.pipeline_mode<synchronous>, transform_indices = @transform_4, window_bounds = array<i64: 1, 128>}, {pipeline_mode = #tpu.pipeline_mode<synchronous>, transform_indices = @transform_5, window_bounds = array<i64: 128, 128>}, {pipeline_mode = #tpu.pipeline_mode<synchronous>, transform_indices = @transform_6, window_bounds = array<i64: 1, 128>}, {pipeline_mode = #tpu.pipeline_mode<synchronous>, transform_indices = @transform_7, window_bounds = array<i64: 128, 128>}, {pipeline_mode = #tpu.pipeline_mode<synchronous>, transform_indices = @transform_8, window_bounds = array<i64: 1, 128>}, {transform_indices = @transform_9, window_bounds = array<i64: 8, 128>}]} {
    %c0 = arith.constant 0 : index
    %c0_0 = arith.constant 0 : index
    %0 = vector.load %arg1[%c0, %c0_0] : memref<8x16xf32, #tpu.memory_space<vmem>>, vector<8x16xf32>
    %c0_1 = arith.constant 0 : index
    %c0_2 = arith.constant 0 : index
    %1 = vector.load %arg2[%c0_1, %c0_2] : memref<16x128xf32, #tpu.memory_space<vmem>>, vector<16x128xf32>
    %cst = arith.constant dense<0.000000e+00> : vector<8x128xf32>
    %2 = tpu.matmul %0, %1, %cst {dimension_numbers = #tpu.dot_dimension_numbers<[1], [0], [0], [1], [0, 0, 1, 1], [], []>} : vector<8x16xf32>, vector<16x128xf32>, vector<8x128xf32> -> vector<8x128xf32>
    %c0_3 = arith.constant 0 : index
    %c0_4 = arith.constant 0 : index
    %3 = vector.load %arg3[%c0_3, %c0_4] : memref<1x128xf32, #tpu.memory_space<vmem>>, vector<1x128xf32>
    %4 = vector.broadcast %3 : vector<1x128xf32> to vector<8x128xf32>
    %5 = arith.addf %2, %4 : vector<8x128xf32>
    %cst_5 = arith.constant 0.000000e+00 : f32
    %6 = vector.broadcast %cst_5 : f32 to vector<8x128xf32>
    %7 = arith.maximumf %5, %6 : vector<8x128xf32>
    %c0_6 = arith.constant 0 : index
    %c0_7 = arith.constant 0 : index
    %8 = vector.load %arg4[%c0_6, %c0_7] : memref<128x128xf32, #tpu.memory_space<vmem>>, vector<128x128xf32>
    %cst_8 = arith.constant dense<0.000000e+00> : vector<8x128xf32>
    %9 = tpu.matmul %7, %8, %cst_8 {dimension_numbers = #tpu.dot_dimension_numbers<[1], [0], [0], [1], [0, 0, 1, 1], [], []>} : vector<8x128xf32>, vector<128x128xf32>, vector<8x128xf32> -> vector<8x128xf32>
    %c0_9 = arith.constant 0 : index
    %c0_10 = arith.constant 0 : index
    %10 = vector.load %arg5[%c0_9, %c0_10] : memref<1x128xf32, #tpu.memory_space<vmem>>, vector<1x128xf32>
    %11 = vector.broadcast %10 : vector<1x128xf32> to vector<8x128xf32>
    %12 = arith.addf %9, %11 : vector<8x128xf32>
    %cst_11 = arith.constant 0.000000e+00 : f32
    %13 = vector.broadcast %cst_11 : f32 to vector<8x128xf32>
    %14 = arith.maximumf %12, %13 : vector<8x128xf32>
    %c0_12 = arith.constant 0 : index
    %c0_13 = arith.constant 0 : index
    %15 = vector.load %arg6[%c0_12, %c0_13] : memref<128x128xf32, #tpu.memory_space<vmem>>, vector<128x128xf32>
    %cst_14 = arith.constant dense<0.000000e+00> : vector<8x128xf32>
    %16 = tpu.matmul %14, %15, %cst_14 {dimension_numbers = #tpu.dot_dimension_numbers<[1], [0], [0], [1], [0, 0, 1, 1], [], []>} : vector<8x128xf32>, vector<128x128xf32>, vector<8x128xf32> -> vector<8x128xf32>
    %c0_15 = arith.constant 0 : index
    %c0_16 = arith.constant 0 : index
    %17 = vector.load %arg7[%c0_15, %c0_16] : memref<1x128xf32, #tpu.memory_space<vmem>>, vector<1x128xf32>
    %18 = vector.broadcast %17 : vector<1x128xf32> to vector<8x128xf32>
    %19 = arith.addf %16, %18 : vector<8x128xf32>
    %cst_17 = arith.constant 0.000000e+00 : f32
    %20 = vector.broadcast %cst_17 : f32 to vector<8x128xf32>
    %21 = arith.maximumf %19, %20 : vector<8x128xf32>
    %c0_18 = arith.constant 0 : index
    %c0_19 = arith.constant 0 : index
    %22 = vector.load %arg8[%c0_18, %c0_19] : memref<128x128xf32, #tpu.memory_space<vmem>>, vector<128x128xf32>
    %cst_20 = arith.constant dense<0.000000e+00> : vector<8x128xf32>
    %23 = tpu.matmul %21, %22, %cst_20 {dimension_numbers = #tpu.dot_dimension_numbers<[1], [0], [0], [1], [0, 0, 1, 1], [], []>} : vector<8x128xf32>, vector<128x128xf32>, vector<8x128xf32> -> vector<8x128xf32>
    %c0_21 = arith.constant 0 : index
    %c0_22 = arith.constant 0 : index
    %24 = vector.load %arg9[%c0_21, %c0_22] : memref<1x128xf32, #tpu.memory_space<vmem>>, vector<1x128xf32>
    %25 = vector.broadcast %24 : vector<1x128xf32> to vector<8x128xf32>
    %26 = arith.addf %23, %25 : vector<8x128xf32>
    %c0_23 = arith.constant 0 : index
    %c0_24 = arith.constant 0 : index
    %27 = vector.load %arg10[%c0_23, %c0_24] : memref<8x128xf32, #tpu.memory_space<vmem>>, vector<8x128xf32>
    tpu.vector_store %arg10[%c0_23, %c0_24], %26 {strides = array<i32>} : memref<8x128xf32, #tpu.memory_space<vmem>>, vector<8x128xf32>,
    return
  }
  func.func @transform_0(%arg0: i32) -> (i32, i32) {
    %c0_i32 = arith.constant 0 : i32
    %c0_i32_0 = arith.constant 0 : i32
    return %arg0, %c0_i32 : i32, i32
  }
  func.func @transform_1(%arg0: i32) -> (i32, i32) {
    %c0_i32 = arith.constant 0 : i32
    %c0_i32_0 = arith.constant 0 : i32
    %c0_i32_1 = arith.constant 0 : i32
    return %c0_i32, %c0_i32_0 : i32, i32
  }
  func.func @transform_2(%arg0: i32) -> (i32, i32) {
    %c0_i32 = arith.constant 0 : i32
    %c0_i32_0 = arith.constant 0 : i32
    %c0_i32_1 = arith.constant 0 : i32
    return %c0_i32, %c0_i32_0 : i32, i32
  }
  func.func @transform_3(%arg0: i32) -> (i32, i32) {
    %c0_i32 = arith.constant 0 : i32
    %c0_i32_0 = arith.constant 0 : i32
    %c0_i32_1 = arith.constant 0 : i32
    return %c0_i32, %c0_i32_0 : i32, i32
  }
  func.func @transform_4(%arg0: i32) -> (i32, i32) {
    %c0_i32 = arith.constant 0 : i32
    %c0_i32_0 = arith.constant 0 : i32
    %c0_i32_1 = arith.constant 0 : i32
    return %c0_i32, %c0_i32_0 : i32, i32
  }
  func.func @transform_5(%arg0: i32) -> (i32, i32) {
    %c0_i32 = arith.constant 0 : i32
    %c0_i32_0 = arith.constant 0 : i32
    %c0_i32_1 = arith.constant 0 : i32
    return %c0_i32, %c0_i32_0 : i32, i32
  }
  func.func @transform_6(%arg0: i32) -> (i32, i32) {
    %c0_i32 = arith.constant 0 : i32
    %c0_i32_0 = arith.constant 0 : i32
    %c0_i32_1 = arith.constant 0 : i32
    return %c0_i32, %c0_i32_0 : i32, i32
  }
  func.func @transform_7(%arg0: i32) -> (i32, i32) {
    %c0_i32 = arith.constant 0 : i32
    %c0_i32_0 = arith.constant 0 : i32
    %c0_i32_1 = arith.constant 0 : i32
    return %c0_i32, %c0_i32_0 : i32, i32
  }
  func.func @transform_8(%arg0: i32) -> (i32, i32) {
    %c0_i32 = arith.constant 0 : i32
    %c0_i32_0 = arith.constant 0 : i32
    %c0_i32_1 = arith.constant 0 : i32
    return %c0_i32, %c0_i32_0 : i32, i32
  }
  func.func @transform_9(%arg0: i32) -> (i32, i32) {
    %c0_i32 = arith.constant 0 : i32
    %c0_i32_0 = arith.constant 0 : i32
    return %arg0, %c0_i32 : i32, i32
  }
}

</mosaic_0001>

<bundles_post_ra>
// kernel: kernel_forward.1
= control target key start
LH: loop header
LB: loop body
LE: loop exit
PB: predicated region body
PF: predicated region fallthrough
CT: control target
= control target key end

     0   :  { %vm39_vm0 = vcmask 130048   ;;  %s414_s1 = inlined_call_operand.vmem [shape: f32[16,128], index: 1, kind: input, shape index: {}]   ;;  %s415_s0 = inlined_call_operand.vmem [shape: f32[8,16], index: 0, kind: input, shape index: {}]   ;;  %s416_s3 = inlined_call_operand.vmem [shape: f32[128,128], index: 3, kind: input, shape index: {}]   ;;  %s417_s2 = inlined_call_operand.vmem [shape: f32[1,128], index: 2, kind: input, shape index: {}]   ;;  %s418_s4 = inlined_call_operand.vmem [shape: f32[1,128], index: 4, kind: input, shape index: {}]   ;;  %s419_s5 = inlined_call_operand.vmem [shape: f32[128,128], index: 5, kind: input, shape index: {}]   ;;  %s420_s6 = inlined_call_operand.vmem [shape: f32[1,128], index: 6, kind: input, shape index: {}]   ;;  %s421_s7 = inlined_call_operand.vmem [shape: f32[128,128], index: 7, kind: input, shape index: {}]   ;;  %s422_s8 = inlined_call_operand.vmem [shape: f32[1,128], index: 8, kind: input, shape index: {}]   ;;  %s423_s9 = inlined_call_operand.vmem [shape: f32[8,128], index: 9, kind: output, shape index: {}]  }
   0x1   :  { %v34_v0 = vld [vmem:[%s414_s1 + $0x8] sm:$0xff]  ;;  %v33_v1 = vld [vmem:[%s414_s1] sm:$0xff]  ;;  %v79_v3 = vld [vmem:[%s416_s3 + $0x78] sm:$0xff] }
   0x2   :  { %57 = vmatpush.msra.mxu0 %v34_v0  ;;  %v32_v2 = vld [vmem:[%s415_s0] sm:$0xff]  ;;  %v78_v4 = vld [vmem:[%s416_s3 + $0x70] sm:$0xff]  ;;  %84 = vmatpush.msra.mxu1 %v79_v3  ;;  %v77_v5 = vld [vmem:[%s416_s3 + $0x68] sm:$0xff] }
   0x3   :  { %v76_v6 = vld [vmem:[%s416_s3 + $0x60] sm:$0xff]  ;;  %v75_v7 = vld [vmem:[%s416_s3 + $0x58] sm:$0xff]  ;;  %v74_v8 = vld [vmem:[%s416_s3 + $0x50] sm:$0xff] }
   0x4   :  { %58 = vmatpush.msra.mxu0 %v33_v1  ;;  %85 = vmatpush.msra.mxu1 %v78_v4  ;;  %v73_v9 = vld [vmem:[%s416_s3 + $0x48] sm:$0xff]  ;;  %v72_v10 = vld [vmem:[%s416_s3 + $0x40] sm:$0xff]  ;;  %v71_v11 = vld [vmem:[%s416_s3 + $0x38] sm:$0xff] }
   0x5   :  { %191 = vmatmul.msk.f32.vlgmr.msra.gmra.mxu0 %vm39_vm0, %v32_v2  ;;  %v70_v12 = vld [vmem:[%s416_s3 + $0x30] sm:$0xff]  ;;  %v69_v13 = vld [vmem:[%s416_s3 + $0x28] sm:$0xff]  ;;  %v68_v14 = vld [vmem:[%s416_s3 + $0x20] sm:$0xff] }
   0x6   :  { %86 = vmatpush.msra.mxu1 %v77_v5  ;;  %v67_v15 = vld [vmem:[%s416_s3 + $0x18] sm:$0xff]  ;;  %v66_v16 = vld [vmem:[%s416_s3 + $0x10] sm:$0xff]  ;;  %v65_v17 = vld [vmem:[%s416_s3 + $0x8] sm:$0xff] }
   0x7   :  { %v64_v18 = vld [vmem:[%s416_s3] sm:$0xff]  ;;  %v120_v19 = vld [vmem:[%s419_s5 + $0x78] sm:$0xff]  ;;  %v119_v20 = vld [vmem:[%s419_s5 + $0x70] sm:$0xff] }
   0x8   :  { %87 = vmatpush.msra.mxu1 %v76_v6  ;;  %125 = vmatpush.msra.mxu2 %v120_v19  ;;  %v118_v21 = vld [vmem:[%s419_s5 + $0x68] sm:$0xff]  ;;  %v117_v22 = vld [vmem:[%s419_s5 + $0x60] sm:$0xff]  ;;  %v116_v23 = vld [vmem:[%s419_s5 + $0x58] sm:$0xff] }
   0x9   :  { %v115_v24 = vld [vmem:[%s419_s5 + $0x50] sm:$0xff]  ;;  %v114_v25 = vld [vmem:[%s419_s5 + $0x48] sm:$0xff]  ;;  %v113_v26 = vld [vmem:[%s419_s5 + $0x40] sm:$0xff] }
   0xa   :  { %88 = vmatpush.msra.mxu1 %v75_v7  ;;  %126 = vmatpush.msra.mxu2 %v119_v20  ;;  %v112_v27 = vld [vmem:[%s419_s5 + $0x38] sm:$0xff]  ;;  %v111_v28 = vld [vmem:[%s419_s5 + $0x30] sm:$0xff]  ;;  %v110_v29 = vld [vmem:[%s419_s5 + $0x28] sm:$0xff] }
   0xb   :  { %v109_v30 = vld [vmem:[%s419_s5 + $0x20] sm:$0xff]  ;;  %v108_v31 = vld [vmem:[%s419_s5 + $0x18] sm:$0xff]  ;;  %v107_v36 = vld [vmem:[%s419_s5 + $0x10] sm:$0xff] }
   0xc   :  { %89 = vmatpush.msra.mxu1 %v74_v8  ;;  %127 = vmatpush.msra.mxu2 %v118_v21  ;;  %v192_v32 = vld [vmem:[%s417_s2] ss:$0 sm:$0xff]  ;;  %v106_v37 = vld [vmem:[%s419_s5 + $0x8] sm:$0xff]  ;;  %v161_v39 = vld [vmem:[%s421_s7 + $0x78] sm:$0xff] }
   0xd   :  { %v105_v38 = vld [vmem:[%s419_s5] sm:$0xff]  ;;  %v160_v40 = vld [vmem:[%s421_s7 + $0x70] sm:$0xff]  ;;  %166 = vmatpush.msra.mxu3 %v161_v39  ;;  %v159_v41 = vld [vmem:[%s421_s7 + $0x68] sm:$0xff] }
   0xe   :  { %90 = vmatpush.msra.mxu1 %v73_v9  ;;  %128 = vmatpush.msra.mxu2 %v117_v22  ;;  %v158_v42 = vld [vmem:[%s421_s7 + $0x60] sm:$0xff]  ;;  %v157_v43 = vld [vmem:[%s421_s7 + $0x58] sm:$0xff]  ;;  %v156_v44 = vld [vmem:[%s421_s7 + $0x50] sm:$0xff] }
   0xf   :  { %167 = vmatpush.msra.mxu3 %v160_v40  ;;  %v155_v45 = vld [vmem:[%s421_s7 + $0x48] sm:$0xff]  ;;  %v154_v46 = vld [vmem:[%s421_s7 + $0x40] sm:$0xff]  ;;  %v153_v47 = vld [vmem:[%s421_s7 + $0x38] sm:$0xff] }
  0x10   :  { %91 = vmatpush.msra.mxu1 %v72_v10  ;;  %129 = vmatpush.msra.mxu2 %v116_v23  ;;  %v152_v48 = vld [vmem:[%s421_s7 + $0x30] sm:$0xff]  ;;  %v151_v49 = vld [vmem:[%s421_s7 + $0x28] sm:$0xff]  ;;  %v150_v50 = vld [vmem:[%s421_s7 + $0x20] sm:$0xff] }
  0x11   :  { %168 = vmatpush.msra.mxu3 %v159_v41  ;;  %v149_v51 = vld [vmem:[%s421_s7 + $0x18] sm:$0xff]  ;;  %v193_v52 = vld [vmem:[%s418_s4] ss:$0 sm:$0xff]  ;;  %v148_v56 = vld [vmem:[%s421_s7 + $0x10] sm:$0xff] }
  0x12   :  { %92 = vmatpush.msra.mxu1 %v71_v11  ;;  %130 = vmatpush.msra.mxu2 %v115_v24  ;;  %v147_v57 = vld [vmem:[%s421_s7 + $0x8] sm:$0xff]  ;;  %v146_v58 = vld [vmem:[%s421_s7] sm:$0xff] }
  0x13   :  { %169 = vmatpush.msra.mxu3 %v158_v42  ;;  %v194_v59 = vld [vmem:[%s420_s6] ss:$0 sm:$0xff] }
  0x14   :  { %93 = vmatpush.msra.mxu1 %v70_v12  ;;  %131 = vmatpush.msra.mxu2 %v114_v25  ;;  %v195_v63 = vld [vmem:[%s422_s8] ss:$0 sm:$0xff] }
  0x15   :  { %170 = vmatpush.msra.mxu3 %v157_v43 }
  0x16   :  { %94 = vmatpush.msra.mxu1 %v69_v13  ;;  %132 = vmatpush.msra.mxu2 %v113_v26 }
  0x17   :  { %171 = vmatpush.msra.mxu3 %v156_v44 }
  0x18   :  { %95 = vmatpush.msra.mxu1 %v68_v14  ;;  %133 = vmatpush.msra.mxu2 %v112_v27 }
  0x19   :  { %172 = vmatpush.msra.mxu3 %v155_v45 }
  0x1a   :  { %96 = vmatpush.msra.mxu1 %v67_v15  ;;  %134 = vmatpush.msra.mxu2 %v111_v28 }
  0x1b   :  { %173 = vmatpush.msra.mxu3 %v154_v46 }
  0x1c   :  { %97 = vmatpush.msra.mxu1 %v66_v16  ;;  %135 = vmatpush.msra.mxu2 %v110_v29 }
  0x1d   :  { %174 = vmatpush.msra.mxu3 %v153_v47 }
  0x1e   :  { %98 = vmatpush.msra.mxu1 %v65_v17  ;;  %136 = vmatpush.msra.mxu2 %v109_v30 }
  0x1f   :  { %175 = vmatpush.msra.mxu3 %v152_v48 }
  0x20   :  { %99 = vmatpush.msra.mxu1 %v64_v18  ;;  %137 = vmatpush.msra.mxu2 %v108_v31 }
  0x21   :  { %176 = vmatpush.msra.mxu3 %v151_v49 }
  0x22   :  { %138 = vmatpush.msra.mxu2 %v107_v36 }
  0x23   :  { %177 = vmatpush.msra.mxu3 %v150_v50 }
  0x24   :  { %139 = vmatpush.msra.mxu2 %v106_v37 }
  0x25   :  { %178 = vmatpush.msra.mxu3 %v149_v51 }
  0x26   :  { %140 = vmatpush.msra.mxu2 %v105_v38 }
  0x27   :  { %179 = vmatpush.msra.mxu3 %v148_v56 }
  0x29   :  { %180 = vmatpush.msra.mxu3 %v147_v57 }
  0x2b   :  { %181 = vmatpush.msra.mxu3 %v146_v58 }
  0x82   :  { %v60_v33 = vpop.f32.mrf.mxu0 }
  0x83   :  { %v61_v34 = vadd.f32 %v192_v32, %v60_v33 }
  0x85   :  { %v63_v35 = vmax.f32 %v61_v34, 0.0 }
  0x87   :  { %100 = vmatmul.f32.vlgmr.msra.gmra.mxu1 %v63_v35 }
 0x104   :  { %v101_v53 = vpop.f32.mrf.mxu1 }
 0x105   :  { %v102_v54 = vadd.f32 %v193_v52, %v101_v53 }
 0x107   :  { %v104_v55 = vmax.f32 %v102_v54, 0.0 }
 0x109   :  { %141 = vmatmul.f32.vlgmr.msra.gmra.mxu2 %v104_v55 }
 0x18c   :  { %v142_v60 = vpop.f32.mrf.mxu2 }
 0x18d   :  { %v143_v61 = vadd.f32 %v194_v59, %v142_v60 }
 0x18f   :  { %v145_v62 = vmax.f32 %v143_v61, 0.0 }
 0x191   :  { %182 = vmatmul.f32.vlgmr.msra.gmra.mxu3 %v145_v62 }
 0x214   :  { %v183_v0 = vpop.f32.mrf.mxu3 }
 0x215   :  { %v184_v1 = vadd.f32 %v195_v63, %v183_v0 }
 0x217   :  { %186 = vst [vmem:[%s423_s9] sm:$0xff] %v184_v1 }

</bundles_post_ra>
